<compile_context>
chip_gen: v5e
topology: v5e:2x2
jax: 0.10.0
libtpu: 0.0.40
codegen_flags: <defaults>
</compile_context>

<pallas_src>
import functools

import jax
import jax.numpy as jnp
from jax.experimental import pallas as pl
from jax.experimental.pallas import tpu as pltpu

LANES = 128
MAX_TILE_ROWS = 2048  # 2048 * 128 * 4B = 1 MiB per f32 input buffer.


def _asym_mse_kernel(pred_ref, tgt_ref, out_ref, *,
                     underpredict_weight, rows_total, tile_rows, need_mask):
    pred = pred_ref[...].astype(jnp.float32)
    tgt = tgt_ref[...].astype(jnp.float32)
    err = pred - tgt
    sq = err * err
    # Single where on the squared error (saves one VPU multiply per element).
    weighted = jnp.where(err < 0, jnp.float32(underpredict_weight) * sq, sq)
    if need_mask:
        # The last block may extend past rows_total; those rows contain
        # unspecified data (clipped DMA) and must not contribute to the sum.
        row = (jax.lax.broadcasted_iota(jnp.int32, weighted.shape, 0)
               + pl.program_id(0) * tile_rows)
        weighted = jnp.where(row < rows_total, weighted, jnp.float32(0.0))
    # Per-block partial sum -> own output slot (no cross-step accumulation).
    out_ref[0, 0] = jnp.sum(weighted)


def asymmetric_mse_loss(predictions, targets, underpredict_weight=2.0):
    assert predictions.shape == targets.shape
    n_elems = predictions.size

    flat_p = predictions.reshape(-1)
    flat_t = targets.reshape(-1)

    rows_total = n_elems // LANES
    bulk = rows_total * LANES
    rem = n_elems - bulk

    total = jnp.float32(0.0)

    if rows_total > 0:
        p2d = flat_p[:bulk].reshape(rows_total, LANES)
        t2d = flat_t[:bulk].reshape(rows_total, LANES)

        # Whole-array block for small inputs (block == full dim is always
        # legal), capped at MAX_TILE_ROWS for large ones.
        tile_rows = rows_total if rows_total <= MAX_TILE_ROWS else MAX_TILE_ROWS
        num_blocks = -(-rows_total // tile_rows)
        need_mask = (rows_total % tile_rows) != 0

        kernel = functools.partial(
            _asym_mse_kernel,
            underpredict_weight=float(underpredict_weight),
            rows_total=int(rows_total),
            tile_rows=int(tile_rows),
            need_mask=bool(need_mask),
        )

        partials = pl.pallas_call(
            kernel,
            out_shape=jax.ShapeDtypeStruct((num_blocks, 1), jnp.float32),
            grid_spec=pltpu.PrefetchScalarGridSpec(
                num_scalar_prefetch=0,
                grid=(num_blocks,),
                in_specs=[
                    pl.BlockSpec((tile_rows, LANES), lambda i: (i, 0)),
                    pl.BlockSpec((tile_rows, LANES), lambda i: (i, 0)),
                ],
                out_specs=pl.BlockSpec((1, 1), lambda i: (i, 0),
                                       memory_space=pltpu.SMEM),
            ),
            compiler_params=pltpu.CompilerParams(
                dimension_semantics=("parallel",),
            ),
        )(p2d, t2d)
        total = total + jnp.sum(partials, dtype=jnp.float32)

    if rem > 0:
        # Tiny ragged tail (< 128 elements): plain JAX contribution.
        tp = flat_p[bulk:].astype(jnp.float32)
        tt = flat_t[bulk:].astype(jnp.float32)
        terr = tp - tt
        tsq = terr * terr
        tweighted = jnp.where(terr < 0,
                              jnp.float32(underpredict_weight) * tsq, tsq)
        total = total + jnp.sum(tweighted)

    return total / jnp.float32(n_elems)


if __name__ == "__main__":
    key = jax.random.PRNGKey(0)
    k1, k2 = jax.random.split(key)
    # Shapes implied by a typical regression output: (batch, channels, H, W)
    shape = (2, 4, 16, 16)
    predictions = jax.random.normal(k1, shape, dtype=jnp.float32)
    targets = jax.random.normal(k2, shape, dtype=jnp.float32)

    loss = asymmetric_mse_loss(predictions, targets, underpredict_weight=2.0)
    loss = jax.block_until_ready(loss)

    # Pure-JAX reference (same semantics as the PyTorch module).
    errors = predictions - targets
    weights = jnp.where(errors < 0, 2.0, 1.0)
    ref = jnp.mean(weights * errors ** 2)
    assert jnp.allclose(loss, ref, rtol=1e-6, atol=1e-6), (loss, ref)

    print("KERNEL_OK")
</pallas_src>

<mosaic_0001>
module attributes {stable_mosaic.version = 11 : i64} {
  func.func @_asym_mse_kernel(%arg0: i32, %arg1: memref<16x128xf32, #tpu.memory_space<vmem>>, %arg2: memref<16x128xf32, #tpu.memory_space<vmem>>, %arg3: memref<1x1xf32, #tpu.memory_space<smem>>) attributes {dimension_semantics = [#tpu.dimension_semantics<parallel>], iteration_bounds = array<i64: 1>, scalar_prefetch = 0 : i64, scratch_operands = 0 : i64, tpu.core_type = #tpu.core_type<tc>, window_params = [{transform_indices = @transform_0, window_bounds = array<i64: 16, 128>}, {transform_indices = @transform_1, window_bounds = array<i64: 16, 128>}, {transform_indices = @transform_2, window_bounds = array<i64: 1, 1>}]} {
    %c0 = arith.constant 0 : index
    %c0_0 = arith.constant 0 : index
    %0 = vector.load %arg1[%c0, %c0_0] : memref<16x128xf32, #tpu.memory_space<vmem>>, vector<16x128xf32>
    %c0_1 = arith.constant 0 : index
    %c0_2 = arith.constant 0 : index
    %1 = vector.load %arg2[%c0_1, %c0_2] : memref<16x128xf32, #tpu.memory_space<vmem>>, vector<16x128xf32>
    %2 = arith.subf %0, %1 : vector<16x128xf32>
    %3 = arith.mulf %2, %2 : vector<16x128xf32>
    %cst = arith.constant 0.000000e+00 : f32
    %4 = vector.broadcast %cst : f32 to vector<16x128xf32>
    %5 = arith.cmpf olt, %2, %4 : vector<16x128xf32>
    %cst_3 = arith.constant 2.000000e+00 : f32
    %6 = vector.broadcast %cst_3 : f32 to vector<16x128xf32>
    %7 = arith.mulf %6, %3 : vector<16x128xf32>
    %8 = arith.select %5, %7, %3 : vector<16x128xi1>, vector<16x128xf32>
    %9 = vector.shape_cast %8 : vector<16x128xf32> to vector<1x16x128xf32>
    %cst_4 = arith.constant dense<0.000000e+00> : vector<1xf32>
    %10 = vector.multi_reduction <add>, %9, %cst_4 [1, 2] : vector<1x16x128xf32> to vector<1xf32>
    %11 = vector.shape_cast %10 : vector<1xf32> to vector<1x1x1xf32>
    %12 = vector.extract %11[0, 0, 0] : f32 from vector<1x1x1xf32>
    %c0_5 = arith.constant 0 : index
    %c0_6 = arith.constant 0 : index
    %13 = memref.load %arg3[%c0_5, %c0_6] : memref<1x1xf32, #tpu.memory_space<smem>>
    memref.store %12, %arg3[%c0_5, %c0_6] : memref<1x1xf32, #tpu.memory_space<smem>>
    return
  }
  func.func @transform_0(%arg0: i32) -> (i32, i32) {
    %c0_i32 = arith.constant 0 : i32
    %c0_i32_0 = arith.constant 0 : i32
    return %arg0, %c0_i32 : i32, i32
  }
  func.func @transform_1(%arg0: i32) -> (i32, i32) {
    %c0_i32 = arith.constant 0 : i32
    %c0_i32_0 = arith.constant 0 : i32
    return %arg0, %c0_i32 : i32, i32
  }
  func.func @transform_2(%arg0: i32) -> (i32, i32) {
    %c0_i32 = arith.constant 0 : i32
    %c0_i32_0 = arith.constant 0 : i32
    return %arg0, %c0_i32 : i32, i32
  }
}

</mosaic_0001>

<bundles_post_ra>
// kernel: tpu_custom_call.1
= control target key start
LH: loop header
LB: loop body
LE: loop exit
PB: predicated region body
PF: predicated region fallthrough
CT: control target
= control target key end

     0   :  { %7 = vsyncpa [#allocation3], 0  ;;  %s189_s0 = inlined_call_operand.hbm [shape: f32[16,128], index: 0, kind: input, shape index: {}]   ;;  %s190_s1 = inlined_call_operand.hbm [shape: f32[16,128], index: 1, kind: input, shape index: {}]   ;;  %s191_s2 = inlined_call_operand.hbm [shape: f32[1,1], index: 2, kind: output, shape index: {}]  }
   0x1   :  { %8 = vsyncpa [#allocation6], 0 }
   0x2   :  { %9 = vsyncpa [#allocation4], 0  ;;  %s14_s11 = sshll.u32 %s189_s0, 4  ;;  %s160_s12 = smov [#allocation2]   ;;  %s15_s11 = int_to_ptr.hbm [resolvable:$true] %s14_s11 }
   0x3   :  { %s16_s13 = sshll.u32 %s160_s12, 4  ;;  %s27_s16 = sshll.u32 %s190_s1, 4  ;;  %s17_s13 = int_to_ptr.vmem [resolvable:$true] %s16_s13  ;;  %s28_s16 = int_to_ptr.hbm [resolvable:$true] %s27_s16 }
   0x4   :  { %s161_s17 = smov 128   ;;  %s162_s18 = smov 8  }
   0x5   :  { %22 = dma.hbm_to_vmem [thread:$0]  %s15_s11, 256, %s17_s13, [#allocation3], %s161_s17, %s161_s17, %s162_s18  }
   0x6   :  { %s163_s19 = smov [#allocation5]  }
   0x7   :  { %s29_s20 = sshll.u32 %s163_s19, 4  ;;  %s30_s20 = int_to_ptr.vmem [resolvable:$true] %s29_s20 }
   0x8   :  { %35 = dma.hbm_to_vmem [thread:$0]  %s28_s16, 256, %s30_s20, [#allocation6], %s161_s17, %s161_s17, %s162_s18  }
   0x9   :  { %154 = dma.done.wait [#allocation3], 256  }
   0xa   :  { %155 = vsyncadd [#allocation3], 4294967040 }
   0xb   :  { %156 = dma.done.wait [#allocation6], 256  }
   0xc   :  { %157 = vsyncadd [#allocation6], 4294967040  ;;  %v44_v0 = vld [vmem:[#allocation2] sm:$0xff]  ;;  %v45_v1 = vld [vmem:[#allocation2 + $0x8] sm:$0xff]  ;;  %s75_s21 = sshll.u32 %s191_s2, 4  ;;  %s164_s23 = smov [#allocation7]   ;;  %s76_s21 = int_to_ptr.hbm [resolvable:$true] %s75_s21 }
   0xd   :  { %v46_v2 = vld [vmem:[#allocation5] sm:$0xff]  ;;  %v47_v3 = vld [vmem:[#allocation5 + $0x8] sm:$0xff] }
   0xe   :  { %v48_v4 = vsub.f32 %v44_v0, %v46_v2  ;;  %v49_v5 = vsub.f32 %v45_v1, %v47_v3 }
  0x10   :  { %v50_v6 = vmul.f32 %v48_v4, %v48_v4  ;;  %v51_v7 = vmul.f32 %v49_v5, %v49_v5  ;;  %vm52_vm0 = vcmp.lt.f32.partialorder %v48_v4, 0.0  ;;  %vm53_vm1 = vcmp.lt.f32.partialorder %v49_v5, 0.0 }
  0x12   :  { %v54_v8 = vmul.f32 2.0, %v50_v6  ;;  %v55_v9 = vmul.f32 2.0, %v51_v7 }
  0x14   :  { %v56_v10 = vsel %vm52_vm0, %v54_v8, %v50_v6  ;;  %v57_v11 = vsel %vm53_vm1, %v55_v9, %v51_v7 }
  0x15   :  { %v58_v12 = vadd.f32 %v57_v11, %v56_v10 }
  0x17   :  { %59 = vadd.xlane.f32.xlu0 %v58_v12 }
  0x8a   :  { %v60_v13 = vpop.xlane.xlu0 %59 }
  0x8b   :  { %v61_v14 = vrot.slane %v60_v13, 4 }
  0x8d   :  { %v62_v15 = vadd.f32 %v61_v14, %v60_v13 }
  0x8f   :  { %v63_v16 = vrot.slane %v62_v15, 2 }
  0x91   :  { %v64_v17 = vadd.f32 %v63_v16, %v62_v15 }
  0x93   :  { %v65_v18 = vrot.slane %v64_v17, 1 }
  0x95   :  { %v66_v19 = vadd.f32 %v65_v18, %v64_v17 }
  0x97   :  { %87 = vpush %v66_v19 }
  0xc8   :  { %s88_s22 = spop %87 }
  0xc9   :  { %69 = sst [smem:[#allocation7]] %s88_s22 }
  0xca   :  { %78 = dma.smem_to_hbm %s164_s23, 16, %s76_s21, [#allocation4]  }
  0xcb   :  { %158 = dma.done.wait [#allocation4], 16  }
  0xcc   :  { %159 = vsyncadd [#allocation4], 4294967280 }
  0xcd   :  { %83 = sfence }
  0xce   :  { %84 = vsyncpa [#allocation3], 1 }
  0xcf   :  { %85 = vsyncpa [#allocation6], 1 }
  0xd0   :  { %86 = vsyncpa [#allocation4], 1 }

</bundles_post_ra>
